<compile_context>
chip_gen: v5e
topology: v5e:2x2
jax: 0.10.0
libtpu: 0.0.40
codegen_flags: <defaults>
</compile_context>

<pallas_src>
import functools

import jax
import jax.numpy as jnp
import numpy as np
from jax import lax
from jax.experimental import pallas as pl
from jax.experimental.pallas import tpu as pltpu


def _round_up(n, m):
    return ((n + m - 1) // m) * m


def _fused_forward_kernel(x_ref, w1_ref, w2_ref, txt_ref, o_ref, mix_ref, *,
                          ratio, num_constraints, rows_per_task):
    """Single grid step; everything resident in VMEM.

    x_ref  : (R, D)      all task latents flattened, R = (K+2) * Np_pad
    w1_ref : (K+1, D, H) adapter Linear1 (computed as x @ W1, bias-free)
    w2_ref : (K+1, H, D) adapter Linear2
    txt_ref: (D, Cp)     normalized text features^T, logit_scale pre-folded,
                         class dim padded to 128 lanes
    o_ref  : (R, Cp)     logits, one lane/sublane-dense store
    mix_ref: (R, D)      VMEM scratch holding the blended features
    """
    K, Np = num_constraints, rows_per_task

    def adapt(row0, nrows, g):
        xg = x_ref[pl.ds(row0, nrows), :]
        h = jnp.maximum(
            jnp.dot(xg, w1_ref[g], preferred_element_type=jnp.float32), 0.0)
        a = jnp.maximum(
            jnp.dot(h, w2_ref[g], preferred_element_type=jnp.float32), 0.0)
        # residual blend:  ratio*a + (1-ratio)*x  ==  x + ratio*(a - x)
        mix_ref[pl.ds(row0, nrows), :] = xg + ratio * (a - xg)

    for g in range(K):            # auxiliary adapters, one task each (unrolled)
        adapt(g * Np, Np, g)
    adapt(K * Np, 2 * Np, K)      # primary adapter: BOTH primary tasks, one matmul

    # shared epilogue + projection, batched across all tasks:
    # one (R,D)@(D,Cp) matmul, one dense (R,Cp) store.
    mixed = mix_ref[...]
    sq = jnp.sum(mixed * mixed, axis=-1, keepdims=True)
    f = mixed * lax.rsqrt(sq)     # L2-normalize; logit_scale already in txt_ref
    o_ref[...] = jnp.dot(f, txt_ref[...], preferred_element_type=jnp.float32)


def fused_forward(x_flat, w1_stack, w2_stack, txt_scaled_t, *,
                  ratio, num_constraints, rows_per_task):
    """One pallas_call, one grid step, all tasks fused."""
    R, D = x_flat.shape
    Kp1, _, H = w1_stack.shape
    Cp = txt_scaled_t.shape[1]
    kernel = functools.partial(
        _fused_forward_kernel, ratio=float(ratio),
        num_constraints=num_constraints, rows_per_task=rows_per_task)
    cost = pl.CostEstimate(
        flops=int(2 * R * (2 * D * H + D * Cp)),
        transcendentals=int(R),
        bytes_accessed=int(4 * (R * D + 2 * Kp1 * D * H + D * Cp + R * Cp)))
    # TODO(synk): at real CLIP dims (D>=512, large Np/Cp) add Np/Cp grid tiling,
    # bf16 MXU operands and an explicit vmem_limit_bytes (v7x has 64 MiB VMEM).
    return pl.pallas_call(
        kernel,
        out_shape=jax.ShapeDtypeStruct((R, Cp), jnp.float32),
        grid=(1,),
        in_specs=[
            pl.BlockSpec((R, D), lambda i: (0, 0)),
            pl.BlockSpec((Kp1, D, H), lambda i: (0, 0, 0)),
            pl.BlockSpec((Kp1, H, D), lambda i: (0, 0, 0)),
            pl.BlockSpec((D, Cp), lambda i: (0, 0)),
        ],
        out_specs=pl.BlockSpec((R, Cp), lambda i: (0, 0)),
        scratch_shapes=[pltpu.VMEM((R, D), jnp.float32)],
        cost_estimate=cost,
    )(x_flat, w1_stack, w2_stack, txt_scaled_t)


@functools.partial(jax.jit,
                   static_argnames=("ratio", "num_constraints", "num_classes"))
def _forward_jit(tasks, w1_stack, w2_stack, txt_scaled_t, *,
                 ratio, num_constraints, num_classes):
    """Entire forward (stack, pad, kernel, slice, unstack) under one jit."""
    x = jnp.stack(tasks)                               # (T, N, D)
    T, N, D = x.shape
    n_pad = max(_round_up(N, 8), 8)                    # full sublane groups
    if n_pad != N:
        # pad rows with 1.0 so L2-normalize on pad rows never hits rsqrt(0)
        x = jnp.pad(x, ((0, 0), (0, n_pad - N), (0, 0)), constant_values=1.0)
    x_flat = x.reshape(T * n_pad, D)
    out_flat = fused_forward(x_flat, w1_stack, w2_stack, txt_scaled_t,
                             ratio=ratio, num_constraints=num_constraints,
                             rows_per_task=n_pad)
    out = out_flat.reshape(T, n_pad, -1)[:, :N, :num_classes]
    return tuple(out[i] for i in range(T))


def _xavier_uniform(key, shape):
    fan_in, fan_out = shape
    limit = float(np.sqrt(6.0 / (fan_in + fan_out)))
    return jax.random.uniform(key, shape, jnp.float32, -limit, limit)


class CustomCLIPPallas:
    """JAX/Pallas re-implementation of CustomCLIP.forward.

    The CLIP image/text encoders are NOT re-implemented; text_features are
    synthesized deterministically and L2-normalized (as done in __init__).
    """
    # TODO(synk): CLIP text/image encoders (TextEncoder, encode_image) have no
    # Pallas equivalent here; text features are synthesized deterministically.

    def __init__(self, key, *, feat_dim=32, num_classes=8,
                 num_constraints=2, r_ratio=0.7, reduction=2):
        self.ratio = float(r_ratio)
        self.logit_scale = float(1.0 / 0.07)  # clip_model.logit_scale.exp()
        self.num_constraints = num_constraints
        D, H, C = feat_dim, feat_dim // reduction, num_classes
        self.D, self.H, self.C = D, H, C

        keys = jax.random.split(key, 2 * (num_constraints + 1) + 1)
        # K auxiliary adapters + 1 primary adapter, stacked for the fused kernel.
        w1s, w2s = [], []
        for i in range(num_constraints + 1):
            w1s.append(_xavier_uniform(keys[2 * i], (D, H)))
            w2s.append(_xavier_uniform(keys[2 * i + 1], (H, D)))
        self.w1_stack = jnp.stack(w1s)                  # (K+1, D, H)
        self.w2_stack = jnp.stack(w2s)                  # (K+1, H, D)
        # unstacked views for the pure-JAX reference check
        self.aux_adapters = [(w1s[i], w2s[i]) for i in range(num_constraints)]
        self.pri_w1, self.pri_w2 = w1s[-1], w2s[-1]

        # synthetic, normalized text features (glue, done once in __init__)
        tf = jax.random.normal(keys[-1], (C, D), jnp.float32)
        tf = tf / jnp.linalg.norm(tf, axis=-1, keepdims=True)
        self.text_features = tf                          # (C, D)

        # kernel layout: transposed, logit_scale folded in, class dim padded
        # to a full 128-lane width (sliced back in forward()).
        self.c_pad = max(_round_up(C, 128), 128)
        txt_t = (self.logit_scale * tf).T                # (D, C)
        self.txt_scaled_t = jnp.pad(txt_t, ((0, 0), (0, self.c_pad - C)))

    def forward(self, auxiliary_tasks):
        """auxiliary_tasks: list of (N, D) arrays,
        layout [aux_0, ..., aux_{K-1}, pri_latent, adapted_pri_latent]."""
        outs = _forward_jit(tuple(auxiliary_tasks),
                            self.w1_stack, self.w2_stack, self.txt_scaled_t,
                            ratio=self.ratio,
                            num_constraints=self.num_constraints,
                            num_classes=self.C)
        return list(outs)


def _reference_task(x, w1, w2, txt, ratio, scale):
    h = jnp.maximum(x @ w1, 0.0)
    a = jnp.maximum(h @ w2, 0.0)
    mixed = ratio * a + (1.0 - ratio) * x
    f = mixed / jnp.linalg.norm(mixed, axis=-1, keepdims=True)
    return scale * f @ txt.T


if __name__ == "__main__":
    key = jax.random.PRNGKey(0)
    k_model, k_tasks = jax.random.split(key)

    N, D, C, K = 4, 32, 8, 2          # batch, feat dim, classes, #constraints
    model = CustomCLIPPallas(k_model, feat_dim=D, num_classes=C,
                             num_constraints=K, r_ratio=0.7, reduction=2)

    # auxiliary_tasks = [aux_0, aux_1, pri_latent, adapted_pri_latent]
    task_keys = jax.random.split(k_tasks, K + 2)
    auxiliary_tasks = [jax.random.normal(tk, (N, D), jnp.float32)
                       for tk in task_keys]

    outputs = model.forward(auxiliary_tasks)
    outputs = [jax.block_until_ready(o) for o in outputs]

    # check against pure-JAX reference (aux adapters, then primary twice)
    weights = list(model.aux_adapters) + [(model.pri_w1, model.pri_w2)] * 2
    ok = True
    for out, (w1, w2), x in zip(outputs, weights, auxiliary_tasks):
        ref = _reference_task(x, w1, w2, model.text_features,
                              model.ratio, model.logit_scale)
        ok = ok and bool(jnp.allclose(out, ref, atol=1e-3, rtol=1e-3))
        ok = ok and out.shape == (N, C) and out.dtype == jnp.float32

    print("KERNEL_OK" if ok else "MISMATCH")
</pallas_src>

<mosaic_0001>
module attributes {stable_mosaic.version = 11 : i64} {
  func.func @_fused_forward_kernel(%arg0: i32, %arg1: memref<32x32xf32, #tpu.memory_space<vmem>>, %arg2: memref<3x32x16xf32, #tpu.memory_space<vmem>>, %arg3: memref<3x16x32xf32, #tpu.memory_space<vmem>>, %arg4: memref<32x128xf32, #tpu.memory_space<vmem>>, %arg5: memref<32x128xf32, #tpu.memory_space<vmem>>, %arg6: memref<32x32xf32, #tpu.memory_space<vmem>>) attributes {dimension_semantics = [#tpu.dimension_semantics<arbitrary>], iteration_bounds = array<i64: 1>, scalar_prefetch = 0 : i64, scratch_operands = 1 : i64, tpu.core_type = #tpu.core_type<tc>, window_params = [{pipeline_mode = #tpu.pipeline_mode<synchronous>, transform_indices = @transform_0, window_bounds = array<i64: 32, 32>}, {pipeline_mode = #tpu.pipeline_mode<synchronous>, transform_indices = @transform_1, window_bounds = array<i64: 3, 32, 16>}, {pipeline_mode = #tpu.pipeline_mode<synchronous>, transform_indices = @transform_2, window_bounds = array<i64: 3, 16, 32>}, {pipeline_mode = #tpu.pipeline_mode<synchronous>, transform_indices = @transform_3, window_bounds = array<i64: 32, 128>}, {pipeline_mode = #tpu.pipeline_mode<synchronous>, transform_indices = @transform_4, window_bounds = array<i64: 32, 128>}]} {
    %c0 = arith.constant 0 : index
    %c0_0 = arith.constant 0 : index
    %0 = vector.load %arg1[%c0, %c0_0] : memref<32x32xf32, #tpu.memory_space<vmem>>, vector<8x32xf32>
    %c0_1 = arith.constant 0 : index
    %c0_2 = arith.constant 0 : index
    %c0_3 = arith.constant 0 : index
    %1 = vector.load %arg2[%c0_1, %c0_2, %c0_3] : memref<3x32x16xf32, #tpu.memory_space<vmem>>, vector<1x32x16xf32>
    %2 = vector.shape_cast %1 : vector<1x32x16xf32> to vector<32x16xf32>
    %cst = arith.constant dense<0.000000e+00> : vector<8x16xf32>
    %3 = tpu.matmul %0, %2, %cst {dimension_numbers = #tpu.dot_dimension_numbers<[1], [0], [0], [1], [0, 0, 1, 1], [], []>} : vector<8x32xf32>, vector<32x16xf32>, vector<8x16xf32> -> vector<8x16xf32>
    %cst_4 = arith.constant 0.000000e+00 : f32
    %4 = vector.broadcast %cst_4 : f32 to vector<8x16xf32>
    %5 = arith.maximumf %3, %4 : vector<8x16xf32>
    %c0_5 = arith.constant 0 : index
    %c0_6 = arith.constant 0 : index
    %c0_7 = arith.constant 0 : index
    %6 = vector.load %arg3[%c0_5, %c0_6, %c0_7] : memref<3x16x32xf32, #tpu.memory_space<vmem>>, vector<1x16x32xf32>
    %7 = vector.shape_cast %6 : vector<1x16x32xf32> to vector<16x32xf32>
    %cst_8 = arith.constant dense<0.000000e+00> : vector<8x32xf32>
    %8 = tpu.matmul %5, %7, %cst_8 {dimension_numbers = #tpu.dot_dimension_numbers<[1], [0], [0], [1], [0, 0, 1, 1], [], []>} : vector<8x16xf32>, vector<16x32xf32>, vector<8x32xf32> -> vector<8x32xf32>
    %cst_9 = arith.constant 0.000000e+00 : f32
    %9 = vector.broadcast %cst_9 : f32 to vector<8x32xf32>
    %10 = arith.maximumf %8, %9 : vector<8x32xf32>
    %11 = arith.subf %10, %0 : vector<8x32xf32>
    %cst_10 = arith.constant 0.699999988 : f32
    %12 = vector.broadcast %cst_10 : f32 to vector<8x32xf32>
    %13 = arith.mulf %12, %11 : vector<8x32xf32>
    %14 = arith.addf %0, %13 : vector<8x32xf32>
    %c0_11 = arith.constant 0 : index
    %c0_12 = arith.constant 0 : index
    %15 = vector.load %arg6[%c0_11, %c0_12] : memref<32x32xf32, #tpu.memory_space<vmem>>, vector<8x32xf32>
    tpu.vector_store %arg6[%c0_11, %c0_12], %14 {strides = array<i32>} : memref<32x32xf32, #tpu.memory_space<vmem>>, vector<8x32xf32>,
    %c8 = arith.constant 8 : index
    %c0_13 = arith.constant 0 : index
    %16 = vector.load %arg1[%c8, %c0_13] : memref<32x32xf32, #tpu.memory_space<vmem>>, vector<8x32xf32>
    %c1 = arith.constant 1 : index
    %c0_14 = arith.constant 0 : index
    %c0_15 = arith.constant 0 : index
    %17 = vector.load %arg2[%c1, %c0_14, %c0_15] : memref<3x32x16xf32, #tpu.memory_space<vmem>>, vector<1x32x16xf32>
    %18 = vector.shape_cast %17 : vector<1x32x16xf32> to vector<32x16xf32>
    %cst_16 = arith.constant dense<0.000000e+00> : vector<8x16xf32>
    %19 = tpu.matmul %16, %18, %cst_16 {dimension_numbers = #tpu.dot_dimension_numbers<[1], [0], [0], [1], [0, 0, 1, 1], [], []>} : vector<8x32xf32>, vector<32x16xf32>, vector<8x16xf32> -> vector<8x16xf32>
    %cst_17 = arith.constant 0.000000e+00 : f32
    %20 = vector.broadcast %cst_17 : f32 to vector<8x16xf32>
    %21 = arith.maximumf %19, %20 : vector<8x16xf32>
    %c1_18 = arith.constant 1 : index
    %c0_19 = arith.constant 0 : index
    %c0_20 = arith.constant 0 : index
    %22 = vector.load %arg3[%c1_18, %c0_19, %c0_20] : memref<3x16x32xf32, #tpu.memory_space<vmem>>, vector<1x16x32xf32>
    %23 = vector.shape_cast %22 : vector<1x16x32xf32> to vector<16x32xf32>
    %cst_21 = arith.constant dense<0.000000e+00> : vector<8x32xf32>
    %24 = tpu.matmul %21, %23, %cst_21 {dimension_numbers = #tpu.dot_dimension_numbers<[1], [0], [0], [1], [0, 0, 1, 1], [], []>} : vector<8x16xf32>, vector<16x32xf32>, vector<8x32xf32> -> vector<8x32xf32>
    %cst_22 = arith.constant 0.000000e+00 : f32
    %25 = vector.broadcast %cst_22 : f32 to vector<8x32xf32>
    %26 = arith.maximumf %24, %25 : vector<8x32xf32>
    %27 = arith.subf %26, %16 : vector<8x32xf32>
    %cst_23 = arith.constant 0.699999988 : f32
    %28 = vector.broadcast %cst_23 : f32 to vector<8x32xf32>
    %29 = arith.mulf %28, %27 : vector<8x32xf32>
    %30 = arith.addf %16, %29 : vector<8x32xf32>
    %c8_24 = arith.constant 8 : index
    %c0_25 = arith.constant 0 : index
    %31 = vector.load %arg6[%c8_24, %c0_25] : memref<32x32xf32, #tpu.memory_space<vmem>>, vector<8x32xf32>
    tpu.vector_store %arg6[%c8_24, %c0_25], %30 {strides = array<i32>} : memref<32x32xf32, #tpu.memory_space<vmem>>, vector<8x32xf32>,
    %c16 = arith.constant 16 : index
    %c0_26 = arith.constant 0 : index
    %32 = vector.load %arg1[%c16, %c0_26] : memref<32x32xf32, #tpu.memory_space<vmem>>, vector<16x32xf32>
    %c2 = arith.constant 2 : index
    %c0_27 = arith.constant 0 : index
    %c0_28 = arith.constant 0 : index
    %33 = vector.load %arg2[%c2, %c0_27, %c0_28] : memref<3x32x16xf32, #tpu.memory_space<vmem>>, vector<1x32x16xf32>
    %34 = vector.shape_cast %33 : vector<1x32x16xf32> to vector<32x16xf32>
    %cst_29 = arith.constant dense<0.000000e+00> : vector<16x16xf32>
    %35 = tpu.matmul %32, %34, %cst_29 {dimension_numbers = #tpu.dot_dimension_numbers<[1], [0], [0], [1], [0, 0, 1, 1], [], []>} : vector<16x32xf32>, vector<32x16xf32>, vector<16x16xf32> -> vector<16x16xf32>
    %cst_30 = arith.constant 0.000000e+00 : f32
    %36 = vector.broadcast %cst_30 : f32 to vector<16x16xf32>
    %37 = arith.maximumf %35, %36 : vector<16x16xf32>
    %c2_31 = arith.constant 2 : index
    %c0_32 = arith.constant 0 : index
    %c0_33 = arith.constant 0 : index
    %38 = vector.load %arg3[%c2_31, %c0_32, %c0_33] : memref<3x16x32xf32, #tpu.memory_space<vmem>>, vector<1x16x32xf32>
    %39 = vector.shape_cast %38 : vector<1x16x32xf32> to vector<16x32xf32>
    %cst_34 = arith.constant dense<0.000000e+00> : vector<16x32xf32>
    %40 = tpu.matmul %37, %39, %cst_34 {dimension_numbers = #tpu.dot_dimension_numbers<[1], [0], [0], [1], [0, 0, 1, 1], [], []>} : vector<16x16xf32>, vector<16x32xf32>, vector<16x32xf32> -> vector<16x32xf32>
    %cst_35 = arith.constant 0.000000e+00 : f32
    %41 = vector.broadcast %cst_35 : f32 to vector<16x32xf32>
    %42 = arith.maximumf %40, %41 : vector<16x32xf32>
    %43 = arith.subf %42, %32 : vector<16x32xf32>
    %cst_36 = arith.constant 0.699999988 : f32
    %44 = vector.broadcast %cst_36 : f32 to vector<16x32xf32>
    %45 = arith.mulf %44, %43 : vector<16x32xf32>
    %46 = arith.addf %32, %45 : vector<16x32xf32>
    %c16_37 = arith.constant 16 : index
    %c0_38 = arith.constant 0 : index
    %47 = vector.load %arg6[%c16_37, %c0_38] : memref<32x32xf32, #tpu.memory_space<vmem>>, vector<16x32xf32>
    tpu.vector_store %arg6[%c16_37, %c0_38], %46 {strides = array<i32>} : memref<32x32xf32, #tpu.memory_space<vmem>>, vector<16x32xf32>,
    %c0_39 = arith.constant 0 : index
    %c0_40 = arith.constant 0 : index
    %48 = vector.load %arg6[%c0_39, %c0_40] : memref<32x32xf32, #tpu.memory_space<vmem>>, vector<32x32xf32>
    %49 = arith.mulf %48, %48 : vector<32x32xf32>
    %cst_41 = arith.constant dense<0.000000e+00> : vector<32xf32>
    %50 = vector.multi_reduction <add>, %49, %cst_41 [1] : vector<32x32xf32> to vector<32xf32>
    %51 = vector.shape_cast %50 : vector<32xf32> to vector<32x1xf32>
    %52 = math.rsqrt %51 : vector<32x1xf32>
    %53 = vector.broadcast %52 : vector<32x1xf32> to vector<32x32xf32>
    %54 = arith.mulf %48, %53 : vector<32x32xf32>
    %c0_42 = arith.constant 0 : index
    %c0_43 = arith.constant 0 : index
    %55 = vector.load %arg4[%c0_42, %c0_43] : memref<32x128xf32, #tpu.memory_space<vmem>>, vector<32x128xf32>
    %cst_44 = arith.constant dense<0.000000e+00> : vector<32x128xf32>
    %56 = tpu.matmul %54, %55, %cst_44 {dimension_numbers = #tpu.dot_dimension_numbers<[1], [0], [0], [1], [0, 0, 1, 1], [], []>} : vector<32x32xf32>, vector<32x128xf32>, vector<32x128xf32> -> vector<32x128xf32>
    %c0_45 = arith.constant 0 : index
    %c0_46 = arith.constant 0 : index
    %57 = vector.load %arg5[%c0_45, %c0_46] : memref<32x128xf32, #tpu.memory_space<vmem>>, vector<32x128xf32>
    tpu.vector_store %arg5[%c0_45, %c0_46], %56 {strides = array<i32>} : memref<32x128xf32, #tpu.memory_space<vmem>>, vector<32x128xf32>,
    return
  }
  func.func @transform_0(%arg0: i32) -> (i32, i32) {
    %c0_i32 = arith.constant 0 : i32
    %c0_i32_0 = arith.constant 0 : i32
    %c0_i32_1 = arith.constant 0 : i32
    return %c0_i32, %c0_i32_0 : i32, i32
  }
  func.func @transform_1(%arg0: i32) -> (i32, i32, i32) {
    %c0_i32 = arith.constant 0 : i32
    %c0_i32_0 = arith.constant 0 : i32
    %c0_i32_1 = arith.constant 0 : i32
    %c0_i32_2 = arith.constant 0 : i32
    return %c0_i32, %c0_i32_0, %c0_i32_1 : i32, i32, i32
  }
  func.func @transform_2(%arg0: i32) -> (i32, i32, i32) {
    %c0_i32 = arith.constant 0 : i32
    %c0_i32_0 = arith.constant 0 : i32
    %c0_i32_1 = arith.constant 0 : i32
    %c0_i32_2 = arith.constant 0 : i32
    return %c0_i32, %c0_i32_0, %c0_i32_1 : i32, i32, i32
  }
  func.func @transform_3(%arg0: i32) -> (i32, i32) {
    %c0_i32 = arith.constant 0 : i32
    %c0_i32_0 = arith.constant 0 : i32
    %c0_i32_1 = arith.constant 0 : i32
    return %c0_i32, %c0_i32_0 : i32, i32
  }
  func.func @transform_4(%arg0: i32) -> (i32, i32) {
    %c0_i32 = arith.constant 0 : i32
    %c0_i32_0 = arith.constant 0 : i32
    %c0_i32_1 = arith.constant 0 : i32
    return %c0_i32, %c0_i32_0 : i32, i32
  }
}

</mosaic_0001>

<bundles_post_ra>
// kernel: _forward_jit.1
= control target key start
LH: loop header
LB: loop body
LE: loop exit
PB: predicated region body
PF: predicated region fallthrough
CT: control target
= control target key end

     0   :  { %vm22_vm0 = vcmask 261120   ;;  %vm49_vm1 = vcmask 130048   ;;  %s522_s1 = inlined_call_operand.vmem [shape: f32[3,32,16], index: 1, kind: input, shape index: {}]   ;;  %s523_s0 = inlined_call_operand.vmem [shape: f32[32,32], index: 0, kind: input, shape index: {}]   ;;  %s524_s2 = inlined_call_operand.vmem [shape: f32[3,16,32], index: 2, kind: input, shape index: {}]   ;;  %s525_s3 = inlined_call_operand.vmem [shape: f32[32,128], index: 3, kind: input, shape index: {}]   ;;  %s526_s4 = inlined_call_operand.vmem [shape: f32[32,128], index: 4, kind: output, shape index: {}]  }
   0x1   :  { %v21_v0 = vld [vmem:[%s522_s1 + $0x18] sm:$0xff]  ;;  %v20_v1 = vld [vmem:[%s522_s1 + $0x10] sm:$0xff]  ;;  %v19_v3 = vld [vmem:[%s522_s1 + $0x8] sm:$0xff] }
   0x2   :  { %38 = vmatpush.msra.mxu0 %v21_v0  ;;  %v341_v2 = vld [vmem:[%s522_s1 + $0x38] sm:$0xff]  ;;  %v340_v4 = vld [vmem:[%s522_s1 + $0x30] sm:$0xff]  ;;  %v339_v5 = vld [vmem:[%s522_s1 + $0x28] sm:$0xff] }
   0x3   :  { %99 = vmatpush.msra.mxu2 %v341_v2  ;;  %v18_v6 = vld [vmem:[%s522_s1] sm:$0xff]  ;;  %v78_v9 = vld [vmem:[%s523_s0 + $0x8] sm:$0xff]  ;;  %v349_v12 = vld [vmem:[%s522_s1 + $0x58] sm:$0xff] }
   0x4   :  { %39 = vmatpush.msra.mxu0 %v20_v1  ;;  %v17_v7 = vld [vmem:[%s523_s0] sm:$0xff]  ;;  %v48_v10 = vld [vmem:[%s524_s2 + $0x8] sm:$0xff]  ;;  %v348_v13 = vld [vmem:[%s522_s1 + $0x50] sm:$0xff] }
   0x5   :  { %100 = vmatpush.msra.mxu2 %v340_v4  ;;  %v338_v8 = vld [vmem:[%s522_s1 + $0x20] sm:$0xff]  ;;  %67 = vmatpush.msra.mxu1 %v48_v10  ;;  %v347_v14 = vld [vmem:[%s522_s1 + $0x48] sm:$0xff]  ;;  %v139_v18 = vld [vmem:[%s523_s0 + $0x10] sm:$0xff] }
   0x6   :  { %40 = vmatpush.msra.mxu0 %v19_v3  ;;  %v47_v11 = vld [vmem:[%s524_s2] sm:$0xff]  ;;  %v140_v19 = vld [vmem:[%s523_s0 + $0x18] sm:$0xff]  ;;  %v343_v23 = vld [vmem:[%s524_s2 + $0x10] sm:$0xff] }
   0x7   :  { %101 = vmatpush.msra.mxu2 %v339_v5  ;;  %68 = vmatpush.msra.mxu1 %v47_v11  ;;  %v346_v15 = vld [vmem:[%s522_s1 + $0x40] sm:$0xff]  ;;  %v344_v20 = vld [vmem:[%s524_s2 + $0x18] sm:$0xff]  ;;  %v353_v24 = vld [vmem:[%s524_s2 + $0x28] sm:$0xff] }
   0x8   :  { %41 = vmatpush.msra.mxu0 %v18_v6  ;;  %128 = vmatpush.msra.mxu3 %v344_v20  ;;  %v352_v25 = vld [vmem:[%s524_s2 + $0x20] sm:$0xff]  ;;  %v286_v62 = vld [vmem:[%s525_s3 + $0x18] sm:$0xff]  ;;  %v285_v63 = vld [vmem:[%s525_s3 + $0x10] sm:$0xff] }
   0x9   :  { %336 = vmatmul.msk.f32.vlgmr.msra.gmra.mxu0 %vm22_vm0, %v17_v7  ;;  %102 = vmatpush.msra.mxu2 %v338_v8  ;;  %v284_v0 = vld [vmem:[%s525_s3 + $0x8] sm:$0xff]  ;;  %v283_v1 = vld [vmem:[%s525_s3] sm:$0xff] }
   0xa   :  { %342 = vmatmul.msk.f32.vlgmr.msra.gmra.mxu2 %vm22_vm0, %v78_v9  ;;  %164 = vmatpush.msrb.mxu1 %v349_v12 }
   0xb   :  { %129 = vmatpush.msra.mxu3 %v343_v23  ;;  %360 = vmatpush.msrb.mxu2 %v286_v62 }
   0xc   :  { %165 = vmatpush.msrb.mxu1 %v348_v13  ;;  %311 = vmatpush.msrb.mxu0 %v286_v62 }
   0xd   :  { %200 = vmatpush.msrb.mxu3 %v353_v24  ;;  %361 = vmatpush.msrb.mxu2 %v285_v63 }
   0xe   :  { %166 = vmatpush.msrb.mxu1 %v347_v14  ;;  %312 = vmatpush.msrb.mxu0 %v285_v63 }
   0xf   :  { %201 = vmatpush.msrb.mxu3 %v352_v25  ;;  %362 = vmatpush.msrb.mxu2 %v284_v0 }
  0x10   :  { %167 = vmatpush.msrb.mxu1 %v346_v15  ;;  %313 = vmatpush.msrb.mxu0 %v284_v0 }
  0x11   :  { %363 = vmatpush.msrb.mxu2 %v283_v1 }
  0x12   :  { %314 = vmatpush.msrb.mxu0 %v283_v1 }
  0x86   :  { %v43_v16 = vpop.f32.mrf.mxu0 }
  0x87   :  { %v46_v17 = vmax.f32 %v43_v16, 0.0 }
  0x89   :  { %337 = vmatmul.msk.f32.vlgmr.msra.gmra.mxu1 %vm49_vm1, %v46_v17 }
  0x8d   :  { %v104_v21 = vpop.f32.mrf.mxu2 }
  0x8e   :  { %v107_v22 = vmax.f32 %v104_v21, 0.0 }
  0x90   :  { %345 = vmatmul.msk.f32.vlgmr.msra.gmra.mxu3 %vm49_vm1, %v107_v22 }
  0x91   :  { %350 = vmatmul.msk.f32.vlgmr.msrb.gmra.mxu1 %vm22_vm0, %v139_v18 }
  0x99   :  { %351 = vmatmul.msk.f32.gmra.mxu1 %vm22_vm0, %v140_v19 }
 0x106   :  { %v70_v26 = vpop.f32.mrf.mxu1 }
 0x107   :  { %v73_v27 = vmax.f32 %v70_v26, 0.0 }
 0x109   :  { %v74_v28 = vsub.f32 %v73_v27, %v17_v7 }
 0x10b   :  { %v75_v29 = vmul.f32 0.7, %v74_v28 }
 0x10d   :  { %v76_v30 = vadd.f32 %v75_v29, %v17_v7 }
 0x10e   :  { %v169_v31 = vpop.f32.mrf.mxu1 }
 0x10f   :  { %77 = vst.msk [vmem:[#allocation2] sm:$0xff] %vm22_vm0, %v76_v30  ;;  %v175_v32 = vmax.f32 %v169_v31, 0.0 }
 0x111   :  { %354 = vmatmul.msk.f32.vlgmr.msrb.gmra.mxu3 %vm49_vm1, %v175_v32 }
 0x113   :  { %v131_v35 = vpop.f32.mrf.mxu3 }
 0x114   :  { %v134_v36 = vmax.f32 %v131_v35, 0.0 }
 0x116   :  { %v172_v33 = vpop.f32.mrf.mxu1  ;;  %v135_v37 = vsub.f32 %v134_v36, %v78_v9  ;;  %v476_v53 = vld [vmem:[#allocation2] sm:$0xff] }
 0x117   :  { %v176_v34 = vmax.f32 %v172_v33, 0.0  ;;  %v223_v54 = vmul.f32 %v476_v53, %v476_v53 }
 0x118   :  { %v136_v38 = vmul.f32 0.7, %v135_v37 }
 0x119   :  { %355 = vmatmul.msk.f32.gmra.mxu3 %vm49_vm1, %v176_v34  ;;  %v227_v58 = vsel %vm22_vm0, %v223_v54, 0.0 }
 0x11a   :  { %v137_v39 = vadd.f32 %v136_v38, %v78_v9 }
 0x11c   :  { %138 = vst.msk [vmem:[#allocation2 + $0x8] sm:$0xff] %vm22_vm0, %v137_v39 }
 0x123   :  { %v486_v59 = vld [vmem:[#allocation2 + $0x8] sm:$0xff] }
 0x124   :  { %v224_v60 = vmul.f32 %v486_v59, %v486_v59 }
 0x126   :  { %v230_v61 = vsel %vm22_vm0, %v224_v60, 0.0 }
 0x194   :  { %v203_v40 = vpop.f32.mrf.mxu3 }
 0x195   :  { %v209_v41 = vmax.f32 %v203_v40, 0.0 }
 0x197   :  { %v211_v42 = vsub.f32 %v209_v41, %v139_v18 }
 0x199   :  { %v213_v43 = vmul.f32 0.7, %v211_v42 }
 0x19b   :  { %v215_v44 = vadd.f32 %v213_v43, %v139_v18 }
 0x19c   :  { %v206_v45 = vpop.f32.mrf.mxu3 }
 0x19d   :  { %217 = vst.msk [vmem:[#allocation2 + $0x10] sm:$0xff] %vm22_vm0, %v215_v44  ;;  %v210_v46 = vmax.f32 %v206_v45, 0.0 }
 0x19f   :  { %v212_v47 = vsub.f32 %v210_v46, %v140_v19 }
 0x1a1   :  { %v214_v48 = vmul.f32 0.7, %v212_v47 }
 0x1a3   :  { %v216_v49 = vadd.f32 %v214_v48, %v140_v19 }
 0x1a4   :  { %v221_v50 = vld [vmem:[#allocation2 + $0x10] sm:$0xff] }
 0x1a5   :  { %218 = vst.msk [vmem:[#allocation2 + $0x18] sm:$0xff] %vm22_vm0, %v216_v49  ;;  %v225_v51 = vmul.f32 %v221_v50, %v221_v50 }
 0x1a7   :  { %v233_v52 = vsel %vm22_vm0, %v225_v51, 0.0 }
 0x1a8   :  { %234 = vadd.xlane.f32.xlu0 %v233_v52 }
 0x1ac   :  { %v480_v55 = vld [vmem:[#allocation2 + $0x18] sm:$0xff] }
 0x1ad   :  { %v226_v56 = vmul.f32 %v480_v55, %v480_v55 }
 0x1af   :  { %v236_v57 = vsel %vm22_vm0, %v226_v56, 0.0 }
 0x1b0   :  { %237 = vadd.xlane.f32.xlu1 %v236_v57  ;;  %228 = vadd.xlane.f32.xlu0 %v227_v58 }
 0x1b8   :  { %231 = vadd.xlane.f32.xlu1 %v230_v61 }
 0x21b   :  { %v235_v2 = vpop.xlane.xlu0 %234 }
 0x21c   :  { %364 = vrsqrt.f32 %v235_v2  ;;  %vm265_vm3 = vweird.f32 %v235_v2 }
 0x222   :  { %v365_v3 = vpop.eup %364 }
 0x223   :  { %v260_v4 = vmul.f32 %v365_v3, %v235_v2  ;;  %v238_v5 = vpop.xlane.xlu1 %237  ;;  %v229_v6 = vpop.xlane.xlu0 %228  ;;  %vm266_vm2 = vweird.f32 %v365_v3 }
 0x224   :  { %366 = vrsqrt.f32 %v238_v5  ;;  %vm267_vm4 = vmor %vm265_vm3, %vm266_vm2  ;;  %vm275_vm7 = vweird.f32 %v238_v5  ;;  %vm245_vm9 = vweird.f32 %v229_v6 }
 0x225   :  { %v261_v7 = vmul.f32 %v365_v3, %v260_v4  ;;  %368 = vrsqrt.f32 %v229_v6 }
 0x227   :  { %v262_v8 = vmul.f32 0.5, %v261_v7 }
 0x229   :  { %v263_v9 = vsub.f32 1.5, %v262_v8 }
 0x22a   :  { %v367_v10 = vpop.eup %366 }
 0x22b   :  { %v369_v11 = vpop.eup %368  ;;  %v264_v12 = vmul.f32 %v365_v3, %v263_v9  ;;  %v270_v13 = vmul.f32 %v367_v10, %v238_v5  ;;  %v232_v14 = vpop.xlane.xlu1 %231  ;;  %vm276_vm5 = vweird.f32 %v367_v10 }
 0x22c   :  { %v240_v15 = vmul.f32 %v369_v11, %v229_v6  ;;  %370 = vrsqrt.f32 %v232_v14  ;;  %vm246_vm6 = vweird.f32 %v369_v11  ;;  %vm277_vm8 = vmor %vm275_vm7, %vm276_vm5  ;;  %vm255_vm12 = vweird.f32 %v232_v14 }
 0x22d   :  { %v268_v16 = vsel %vm267_vm4, %v365_v3, %v264_v12  ;;  %v271_v17 = vmul.f32 %v367_v10, %v270_v13  ;;  %vm247_vm10 = vmor %vm245_vm9, %vm246_vm6 }
 0x22e   :  { %v241_v18 = vmul.f32 %v369_v11, %v240_v15  ;;  %v281_v19 = vmul.f32 %v268_v16, %v221_v50 }
 0x22f   :  { %v272_v20 = vmul.f32 0.5, %v271_v17 }
 0x230   :  { %v242_v21 = vmul.f32 0.5, %v241_v18  ;;  %358 = vmatmul.msk.f32.vlgmr.msrb.gmra.mxu2 %vm22_vm0, %v281_v19 }
 0x231   :  { %v273_v22 = vsub.f32 1.5, %v272_v20 }
 0x232   :  { %v371_v23 = vpop.eup %370  ;;  %v243_v24 = vsub.f32 1.5, %v242_v21 }
 0x233   :  { %v274_v25 = vmul.f32 %v367_v10, %v273_v22  ;;  %v250_v26 = vmul.f32 %v371_v23, %v232_v14  ;;  %vm256_vm11 = vweird.f32 %v371_v23 }
 0x234   :  { %v244_v27 = vmul.f32 %v369_v11, %v243_v24  ;;  %vm257_vm13 = vmor %vm255_vm12, %vm256_vm11 }
 0x235   :  { %v251_v28 = vmul.f32 %v371_v23, %v250_v26  ;;  %v278_v29 = vsel %vm277_vm8, %v367_v10, %v274_v25 }
 0x236   :  { %v248_v30 = vsel %vm247_vm10, %v369_v11, %v244_v27  ;;  %v282_v31 = vmul.f32 %v278_v29, %v480_v55 }
 0x237   :  { %v279_v32 = vmul.f32 %v248_v30, %v476_v53  ;;  %v252_v33 = vmul.f32 0.5, %v251_v28 }
 0x238   :  { %359 = vmatmul.msk.f32.gmra.mxu2 %vm22_vm0, %v282_v31 }
 0x239   :  { %v253_v34 = vsub.f32 1.5, %v252_v33  ;;  %356 = vmatmul.msk.f32.vlgmr.msrb.gmra.mxu0 %vm22_vm0, %v279_v32 }
 0x23b   :  { %v254_v35 = vmul.f32 %v371_v23, %v253_v34 }
 0x23d   :  { %v258_v36 = vsel %vm257_vm13, %v371_v23, %v254_v35 }
 0x23e   :  { %v280_v37 = vmul.f32 %v258_v36, %v486_v59 }
 0x241   :  { %357 = vmatmul.msk.f32.gmra.mxu0 %vm22_vm0, %v280_v37 }
 0x2b3   :  { %v322_v38 = vpop.f32.mrf.mxu2 }
 0x2b4   :  { %330 = vst [vmem:[%s526_s4 + $0x10] sm:$0xff] %v322_v38 }
 0x2b6   :  { %v316_v39 = vpop.f32.mrf.mxu0 }
 0x2b7   :  { %328 = vst [vmem:[%s526_s4] sm:$0xff] %v316_v39 }
 0x2bb   :  { %v325_v40 = vpop.f32.mrf.mxu2 }
 0x2bc   :  { %331 = vst [vmem:[%s526_s4 + $0x18] sm:$0xff] %v325_v40 }
 0x2be   :  { %v319_v41 = vpop.f32.mrf.mxu0 }
 0x2bf   :  { %329 = vst [vmem:[%s526_s4 + $0x8] sm:$0xff] %v319_v41 }

</bundles_post_ra>
